<compile_context>
chip_gen: v6e
topology: v6e:2x2x1
jax: 0.10.0
libtpu: 0.0.40
codegen_flags: <defaults>
</compile_context>

<pallas_src>
import functools

import jax
import jax.numpy as jnp
from jax.experimental import pallas as pl
from jax.experimental.pallas import tpu as pltpu

CARDINALITY = 32
BN_EPS = 1e-5


def _ceil_to(x, n):
    return -(-x // n) * n


# --------------------------- device-adaptive tiling --------------------------

@functools.lru_cache(maxsize=None)
def _device_profile():
    """Pick matmul tile size / scoped-VMEM limit from the TPU generation."""
    vmem = 64 * 1024 * 1024
    try:
        vmem = int(pltpu.get_tpu_info().vmem_capacity_bytes)
    except Exception:
        pass
    if vmem >= 96 * 1024 * 1024:           # v5e / v6e: 128 MiB VMEM per core
        return {"tm_max": 512, "vmem_limit": 80 * 1024 * 1024}
    # v7x: 64 MiB VMEM per core -> smaller tiles, conservative scoped limit
    return {"tm_max": 256, "vmem_limit": 40 * 1024 * 1024}


# ----------------------------- Pallas kernels ------------------------------

def _mm_bn_kernel(a_ref, b_ref, s_ref, c_ref, o_ref, *, relu):
    acc = jnp.dot(a_ref[...], b_ref[...], preferred_element_type=jnp.float32)
    out = acc * s_ref[...] + c_ref[...]
    if relu:
        out = jnp.maximum(out, 0.0)
    o_ref[...] = out.astype(o_ref.dtype)


def _mm_bn_res_relu_kernel(a_ref, b_ref, s_ref, c_ref, r_ref, o_ref):
    acc = jnp.dot(a_ref[...], b_ref[...], preferred_element_type=jnp.float32)
    out = acc * s_ref[...] + c_ref[...] + r_ref[...].astype(jnp.float32)
    o_ref[...] = jnp.maximum(out, 0.0).astype(o_ref.dtype)


def _gconv3x3_s1_kernel(x_ref, w_ref, s_ref, c_ref, o_ref, slab_ref, col_ref,
                        *, h, w, owp, row_chunk, n_chunks):
    """Grouped 3x3 / stride-1 conv (one image, one 128-channel pack) + BN + ReLU.

    x_ref  : [h, w, 128]        bf16 (unpadded NHWC slab)
    w_ref  : [9*128, 128]       bf16 block-diagonal packed weights (tap-major K)
    s/c_ref: [1, 128]           f32 BN scale / bias
    o_ref  : [h, w, 128]        bf16 output
    slab   : [3, h+2, owp, 128] bf16 scratch (dj-shifted, zero-haloed slabs)
    col    : [row_chunk*owp, 9*128] bf16 scratch (per-chunk im2col)
    """
    bf16 = jnp.bfloat16
    # ---- build the 3 column-shifted slabs with the halo zeroed, in VMEM ----
    # slab[dj, 1+r, j, :] == x[r, j + dj - 1, :]   (zeros outside the image)
    zrow = jnp.zeros((1, owp, 128), bf16)
    for dj in range(3):
        slab_ref[dj, 0:1, :, :] = zrow              # top halo row
        slab_ref[dj, h + 1:h + 2, :, :] = zrow      # bottom halo row
    slab_ref[1, 1:h + 1, 0:w, :] = x_ref[...]                       # dj=1 aligned
    n0 = min(w, owp - 1)
    slab_ref[0, 1:h + 1, 0:1, :] = jnp.zeros((h, 1, 128), bf16)     # left halo col
    slab_ref[0, 1:h + 1, 1:1 + n0, :] = x_ref[:, 0:n0, :]           # dj=0 shift
    slab_ref[2, 1:h + 1, 0:w - 1, :] = x_ref[:, 1:w, :]             # dj=2 shift
    for dj, start in ((0, 1 + n0), (1, w), (2, w - 1)):             # right / pad cols
        if start < owp:
            slab_ref[dj, 1:h + 1, start:owp, :] = jnp.zeros(
                (h, owp - start, 128), bf16)

    scale = s_ref[...]          # (1, 128) f32
    bias = c_ref[...]

    def chunk(r0):
        # im2col for this chunk of output rows: only leading-dim (row) slices of
        # the slabs -> tile-aligned, reshape-free copies into col_ref.
        for t in range(9):
            di, dj = t // 3, t % 3
            tap = slab_ref[dj, pl.ds(r0 + di, row_chunk), :, :]
            col_ref[:, t * 128:(t + 1) * 128] = tap.reshape(row_chunk * owp, 128)
        # one long-K contraction per chunk; BN + ReLU fused in the epilogue.
        acc = jnp.dot(col_ref[...], w_ref[...],
                      preferred_element_type=jnp.float32)
        out = jnp.maximum(acc * scale + bias, 0.0)
        out = out.reshape(row_chunk, owp, 128)[:, 0:w, :].astype(o_ref.dtype)
        o_ref[pl.ds(r0, row_chunk), :, :] = out

    if n_chunks == 1:
        chunk(0)
    else:
        @pl.loop(0, n_chunks)
        def _(r):
            # last chunk clamps its start (overlapping rewrite is idempotent)
            chunk(jnp.minimum(r * row_chunk, h - row_chunk))


# ------------------------------ kernel builders -----------------------------

@functools.lru_cache(maxsize=None)
def _build_matmul(g, m, k, ng, tm, tn, relu, has_res):
    """Fused (grouped) matmul + BN affine (+residual add) (+ReLU).

    a [g, m, k] bf16, b [g, k, ng] bf16, scale/bias [g, 1, ng] f32,
    optional residual [m, g*ng] bf16 -> out [m, g*ng] bf16 (lane-dense,
    written directly in the final channel-packed layout).
    """
    prof = _device_profile()
    nt = ng // tn
    if has_res:
        kern = _mm_bn_res_relu_kernel
    else:
        kern = functools.partial(_mm_bn_kernel, relu=relu)
    out_map = lambda gi, j, i: (i, gi * nt + j)
    in_specs = [
        pl.BlockSpec((None, tm, k), lambda gi, j, i: (gi, i, 0)),   # activations
        pl.BlockSpec((None, k, tn), lambda gi, j, i: (gi, 0, j)),   # weights
        pl.BlockSpec((None, 1, tn), lambda gi, j, i: (gi, 0, j)),   # BN scale
        pl.BlockSpec((None, 1, tn), lambda gi, j, i: (gi, 0, j)),   # BN bias
    ]
    if has_res:
        in_specs.append(pl.BlockSpec((tm, tn), out_map))            # shortcut
    bytes_acc = 2 * (g * m * k + g * k * ng + m * g * ng) + 8 * g * ng
    if has_res:
        bytes_acc += 2 * m * g * ng
    fn = pl.pallas_call(
        kern,
        out_shape=jax.ShapeDtypeStruct((m, g * ng), jnp.bfloat16),
        grid=(g, nt, m // tm),          # m innermost -> weight block reused
        in_specs=in_specs,
        out_specs=pl.BlockSpec((tm, tn), out_map),
        compiler_params=pltpu.CompilerParams(
            dimension_semantics=("parallel", "parallel", "parallel"),
            vmem_limit_bytes=prof["vmem_limit"]),
        cost_estimate=pl.CostEstimate(
            flops=2 * g * m * k * ng, transcendentals=0,
            bytes_accessed=bytes_acc),
    )
    return jax.jit(fn)


@functools.lru_cache(maxsize=None)
def _build_gconv3x3(packs, n, h, w):
    """Implicit-GEMM grouped 3x3 / stride-1 conv (channels packed 128-wide)."""
    prof = _device_profile()
    owp = _ceil_to(w, 8)                       # sublane-aligned slab width
    row_chunk = max(1, min(h, 512 // owp))     # 256-512 output rows per chunk
    n_chunks = -(-h // row_chunk)
    c = packs * 128
    kern = functools.partial(_gconv3x3_s1_kernel, h=h, w=w, owp=owp,
                             row_chunk=row_chunk, n_chunks=n_chunks)
    fn = pl.pallas_call(
        kern,
        out_shape=jax.ShapeDtypeStruct((n, h, w, c), jnp.bfloat16),
        grid=(packs, n),                       # batch innermost -> weights reused
        in_specs=[
            pl.BlockSpec((None, h, w, 128), lambda p, b: (b, 0, 0, p)),
            pl.BlockSpec((None, 9 * 128, 128), lambda p, b: (p, 0, 0)),
            pl.BlockSpec((None, 1, 128), lambda p, b: (p, 0, 0)),
            pl.BlockSpec((None, 1, 128), lambda p, b: (p, 0, 0)),
        ],
        out_specs=pl.BlockSpec((None, h, w, 128), lambda p, b: (b, 0, 0, p)),
        scratch_shapes=[
            pltpu.VMEM((3, h + 2, owp, 128), jnp.bfloat16),        # dj slabs
            pltpu.VMEM((row_chunk * owp, 9 * 128), jnp.bfloat16),  # im2col chunk
        ],
        compiler_params=pltpu.CompilerParams(
            dimension_semantics=("parallel", "parallel"),
            vmem_limit_bytes=prof["vmem_limit"]),
        cost_estimate=pl.CostEstimate(
            flops=2 * n * packs * h * w * (9 * 128) * 128,
            transcendentals=0,
            bytes_accessed=2 * (2 * n * h * w * c + packs * 9 * 128 * 128)),
    )
    return jax.jit(fn)


# ------------------------------- conv wrappers ------------------------------

def _pick_tm(m, tmax):
    """Largest tile <= tmax that divides m (multiple of 8), else pad fallback."""
    if m <= tmax:
        return m, m
    t = tmax - tmax % 8
    while t >= 64:
        if m % t == 0:
            return t, m
        t -= 8
    return tmax, _ceil_to(m, tmax)


def matmul_bn(a, b, scale, bias, relu, residual=None):
    """a [G, M, K] bf16 -> [M, G*Ng] bf16 with BN(+res)(+ReLU) fused."""
    g, m, k = a.shape
    ng = b.shape[-1]
    prof = _device_profile()
    tn = 256 if ng % 256 == 0 else ng
    tm, mp = _pick_tm(m, prof["tm_max"])
    if mp != m:                                # rare fallback (divisor not found)
        a = jnp.pad(a, ((0, 0), (0, mp - m), (0, 0)))
        if residual is not None:
            residual = jnp.pad(residual, ((0, mp - m), (0, 0)))
    fn = _build_matmul(g, mp, k, ng, tm, tn, bool(relu), residual is not None)
    out = fn(a, b, scale, bias, residual) if residual is not None \
        else fn(a, b, scale, bias)
    return out[:m] if mp != m else out


def conv1x1_bn(x, p, stride, relu, residual=None):
    n = x.shape[0]
    if stride > 1:
        x = x[:, ::stride, ::stride, :]
    oh, ow = x.shape[1], x.shape[2]
    a = x.reshape(1, n * oh * ow, x.shape[-1])
    res = None
    if residual is not None:
        res = residual.reshape(n * oh * ow, residual.shape[-1])
    out = matmul_bn(a, p["B"], p["scale"], p["bias"], relu, res)
    return out.reshape(n, oh, ow, out.shape[-1])


def _im2col_dense(x, kh, kw, stride, pad):
    # Only used for the one-time 7x7 stem conv (tiny 3-channel input).
    n, h, w, c = x.shape
    xp = jnp.pad(x, ((0, 0), (pad, pad), (pad, pad), (0, 0))) if pad else x
    oh = (h + 2 * pad - kh) // stride + 1
    ow = (w + 2 * pad - kw) // stride + 1
    cols = []
    for i in range(kh):
        for j in range(kw):
            cols.append(xp[:, i:i + (oh - 1) * stride + 1:stride,
                           j:j + (ow - 1) * stride + 1:stride, :])
    patches = jnp.stack(cols, axis=3)                 # [N, OH, OW, kh*kw, C]
    return patches.reshape(n * oh * ow, kh * kw * c), oh, ow


def stem_conv_bn_relu(x, p):
    n = x.shape[0]
    a, oh, ow = _im2col_dense(x, 7, 7, 2, 3)          # [M, 49*3]
    a = a.reshape(1, a.shape[0], 49 * 3)
    out = matmul_bn(a, p["B"], p["scale"], p["bias"], relu=True)
    return out.reshape(n, oh, ow, 128)                # 64 real + 64 zero channels


def conv3x3_grouped_bn(x, p, stride):
    """Grouped 3x3 conv (cardinality 32) + BN + ReLU, 128-lane channel packs."""
    n, h, w, c = x.shape
    packs = c // 128
    out = _build_gconv3x3(packs, n, h, w)(x, p["W"], p["scale"], p["bias"])
    if stride > 1:
        # TODO(synk): stride-2 runs the stride-1 implicit-GEMM then subsamples;
        # replaces the old 9x HBM im2col + transpose at ~4x extra MXU cost.
        out = out[:, ::stride, ::stride, :]
    return out


def maxpool_3x3_s2_p1(x):
    """3x3/2 max pool as two separable 3-tap max passes (no 9-way HBM stack)."""
    n, h, w, c = x.shape
    oh = (h - 1) // 2 + 1
    ow = (w - 1) // 2 + 1
    xp = jnp.pad(x, ((0, 0), (1, 1), (1, 1), (0, 0)),
                 constant_values=-jnp.inf)
    r = jnp.maximum(
        jnp.maximum(xp[:, 0:2 * (oh - 1) + 1:2, :, :],
                    xp[:, 1:2 * (oh - 1) + 2:2, :, :]),
        xp[:, 2:2 * (oh - 1) + 3:2, :, :])            # [n, oh, w+2, c]
    out = jnp.maximum(
        jnp.maximum(r[:, :, 0:2 * (ow - 1) + 1:2, :],
                    r[:, :, 1:2 * (ow - 1) + 2:2, :]),
        r[:, :, 2:2 * (ow - 1) + 3:2, :])             # [n, oh, ow, c]
    return out


# ------------------------------- parameters --------------------------------

def _bn_affine(cout):
    gamma = jnp.ones((cout,), jnp.float32)            # PyTorch BN default init
    beta = jnp.zeros((cout,), jnp.float32)
    scale = gamma / jnp.sqrt(1.0 + BN_EPS)            # eval-mode BN folded
    return scale, beta


def _he_conv(key, cout, cin_pg, kh, kw):
    fan_in = cin_pg * kh * kw
    return (jax.random.normal(key, (cout, cin_pg, kh, kw), jnp.float32)
            * (2.0 / fan_in) ** 0.5)


def _make_stem(key):
    w = _he_conv(key, 64, 3, 7, 7)
    scale, bias = _bn_affine(64)
    b = jnp.transpose(w, (2, 3, 1, 0)).reshape(49 * 3, 64)          # (ki,kj,cin)
    b = jnp.concatenate([b, jnp.zeros((49 * 3, 64), b.dtype)], axis=1)  # pad->128
    scale = jnp.concatenate([scale, jnp.ones((64,), jnp.float32)])
    bias = jnp.concatenate([bias, jnp.zeros((64,), jnp.float32)])
    return {"B": b.reshape(1, 49 * 3, 128).astype(jnp.bfloat16),
            "scale": scale.reshape(1, 1, 128),
            "bias": bias.reshape(1, 1, 128)}


def _make_1x1(key, cin, cout, cin_pad=None):
    w = _he_conv(key, cout, cin, 1, 1)
    scale, bias = _bn_affine(cout)
    b = w[:, :, 0, 0].T                                             # [cin, cout]
    if cin_pad is not None and cin_pad > cin:
        b = jnp.concatenate([b, jnp.zeros((cin_pad - cin, cout), b.dtype)], 0)
    return {"B": b.reshape(1, b.shape[0], cout).astype(jnp.bfloat16),
            "scale": scale.reshape(1, 1, cout),
            "bias": bias.reshape(1, 1, cout)}


def _make_conv2(key, d):
    """Grouped 3x3 weights packed into block-diagonal [packs, 9*128, 128].

    Note: block-diagonal packing inflates MXU MACs (128/cpg); these layers are
    DMA/store-bound today, so the densified MXU work is intentional slack.
    """
    cpg = d // CARDINALITY                            # 32x4d: cpg == npg
    w = _he_conv(key, d, cpg, 3, 3)                   # [d, cpg, 3, 3]
    scale, bias = _bn_affine(d)
    gp = 128 // cpg                                   # groups per 128-lane pack
    packs = CARDINALITY // gp                         # = d // 128
    w6 = w.reshape(packs, gp, cpg, cpg, 3, 3)         # [p, g, n, c, ki, kj]
    wt = jnp.transpose(w6, (0, 4, 5, 1, 3, 2)).reshape(packs, 9, gp, cpg, cpg)
    eye = jnp.eye(gp, dtype=w.dtype)
    wbd = jnp.einsum("ptgcn,gh->ptgchn", wt, eye).reshape(packs, 9, 128, 128)
    return {"W": wbd.reshape(packs, 9 * 128, 128).astype(jnp.bfloat16),
            "scale": scale.reshape(packs, 1, 128),
            "bias": bias.reshape(packs, 1, 128)}


def build_resnext101_params(key):
    keys = iter(jax.random.split(key, 256))
    params = {"stem": _make_stem(next(keys))}
    widths = [256, 512, 1024, 2048]
    depths = [3, 4, 23, 3]                            # ResNeXt-101
    stages = []
    in_c = 64
    for si, (w_out, depth) in enumerate(zip(widths, depths)):
        d = w_out // 2                                # 32x4d bottleneck width
        blocks = []
        for bi in range(depth):
            stride = 2 if (si > 0 and bi == 0) else 1
            cpad = 128 if in_c == 64 else None        # stem output is 128-padded
            blk = {"stride": stride,
                   "conv1": _make_1x1(next(keys), in_c, d, cin_pad=cpad),
                   "conv2": _make_conv2(next(keys), d),
                   "conv3": _make_1x1(next(keys), d, w_out)}
            if bi == 0:
                blk["down"] = _make_1x1(next(keys), in_c, w_out, cin_pad=cpad)
            blocks.append(blk)
            in_c = w_out
        stages.append(blocks)
    params["stages"] = stages
    return params


# --------------------------------- forward ---------------------------------

def _bottleneck(x, blk):
    stride = blk["stride"]
    h = conv1x1_bn(x, blk["conv1"], stride=1, relu=True)
    h = conv3x3_grouped_bn(h, blk["conv2"], stride=stride)
    if "down" in blk:
        shortcut = conv1x1_bn(x, blk["down"], stride=stride, relu=False)
    else:
        shortcut = x
    # conv3 + BN + residual add + ReLU fused into one matmul epilogue
    return conv1x1_bn(h, blk["conv3"], stride=1, relu=True, residual=shortcut)


def resnext101_features(x_nchw, params):
    """Equivalent of model_resnext101.forward: NCHW in -> NCHW features out."""
    x = jnp.transpose(x_nchw, (0, 2, 3, 1)).astype(jnp.bfloat16)  # -> NHWC bf16
    x = stem_conv_bn_relu(x, params["stem"])          # 7x7/2 conv + BN + ReLU
    x = maxpool_3x3_s2_p1(x)                          # 3x3/2 max pool
    for blocks in params["stages"]:
        for blk in blocks:
            x = _bottleneck(x, blk)
    return jnp.transpose(x, (0, 3, 1, 2)).astype(jnp.float32)     # -> NCHW f32


# ----------------------------------- main -----------------------------------

if __name__ == "__main__":
    key = jax.random.PRNGKey(0)
    k_x, k_p = jax.random.split(key)

    # Small input consistent with the module (3-channel image, /32 downsample).
    x = jax.random.normal(k_x, (2, 3, 64, 64), jnp.float32)

    params = build_resnext101_params(k_p)

    features = resnext101_features(x, params)
    features = jax.block_until_ready(features)

    assert features.shape == (2, 2048, 2, 2), features.shape
    assert jnp.all(jnp.isfinite(features))
    print("KERNEL_OK")
</pallas_src>

<mosaic_0001>
module attributes {stable_mosaic.version = 11 : i64} {
  func.func @_mm_bn_kernel(%arg0: i32, %arg1: i32, %arg2: i32, %arg3: memref<1x256x147xbf16, #tpu.memory_space<vmem>>, %arg4: memref<1x147x128xbf16, #tpu.memory_space<vmem>>, %arg5: memref<1x1x128xf32, #tpu.memory_space<vmem>>, %arg6: memref<1x1x128xf32, #tpu.memory_space<vmem>>, %arg7: memref<256x128xbf16, #tpu.memory_space<vmem>>) attributes {dimension_semantics = [#tpu.dimension_semantics<parallel>, #tpu.dimension_semantics<parallel>, #tpu.dimension_semantics<parallel>], iteration_bounds = array<i64: 1, 1, 8>, scalar_prefetch = 0 : i64, scratch_operands = 0 : i64, tpu.core_type = #tpu.core_type<tc>, window_params = [{transform_indices = @transform_0, window_bounds = array<i64: 1, 256, 147>}, {transform_indices = @transform_1, window_bounds = array<i64: 1, 147, 128>}, {transform_indices = @transform_2, window_bounds = array<i64: 1, 1, 128>}, {transform_indices = @transform_3, window_bounds = array<i64: 1, 1, 128>}, {transform_indices = @transform_4, window_bounds = array<i64: 256, 128>}]} {
    %c0 = arith.constant 0 : index
    %c0_0 = arith.constant 0 : index
    %c0_1 = arith.constant 0 : index
    %0 = vector.load %arg3[%c0, %c0_0, %c0_1] : memref<1x256x147xbf16, #tpu.memory_space<vmem>>, vector<1x256x147xbf16>
    %1 = vector.shape_cast %0 : vector<1x256x147xbf16> to vector<256x147xbf16>
    %c0_2 = arith.constant 0 : index
    %c0_3 = arith.constant 0 : index
    %c0_4 = arith.constant 0 : index
    %2 = vector.load %arg4[%c0_2, %c0_3, %c0_4] : memref<1x147x128xbf16, #tpu.memory_space<vmem>>, vector<1x147x128xbf16>
    %3 = vector.shape_cast %2 : vector<1x147x128xbf16> to vector<147x128xbf16>
    %cst = arith.constant dense<0.000000e+00> : vector<256x128xf32>
    %4 = tpu.matmul %1, %3, %cst {dimension_numbers = #tpu.dot_dimension_numbers<[1], [0], [0], [1], [0, 0, 1, 1], [], []>} : vector<256x147xbf16>, vector<147x128xbf16>, vector<256x128xf32> -> vector<256x128xf32>
    %c0_5 = arith.constant 0 : index
    %c0_6 = arith.constant 0 : index
    %c0_7 = arith.constant 0 : index
    %5 = vector.load %arg5[%c0_5, %c0_6, %c0_7] : memref<1x1x128xf32, #tpu.memory_space<vmem>>, vector<1x1x128xf32>
    %6 = vector.shape_cast %5 : vector<1x1x128xf32> to vector<1x128xf32>
    %7 = vector.broadcast %6 : vector<1x128xf32> to vector<256x128xf32>
    %8 = arith.mulf %4, %7 : vector<256x128xf32>
    %c0_8 = arith.constant 0 : index
    %c0_9 = arith.constant 0 : index
    %c0_10 = arith.constant 0 : index
    %9 = vector.load %arg6[%c0_8, %c0_9, %c0_10] : memref<1x1x128xf32, #tpu.memory_space<vmem>>, vector<1x1x128xf32>
    %10 = vector.shape_cast %9 : vector<1x1x128xf32> to vector<1x128xf32>
    %11 = vector.broadcast %10 : vector<1x128xf32> to vector<256x128xf32>
    %12 = arith.addf %8, %11 : vector<256x128xf32>
    %cst_11 = arith.constant 0.000000e+00 : f32
    %13 = vector.broadcast %cst_11 : f32 to vector<256x128xf32>
    %14 = arith.maximumf %12, %13 : vector<256x128xf32>
    %15 = arith.truncf %14 : vector<256x128xf32> to vector<256x128xbf16>
    %c0_12 = arith.constant 0 : index
    %c0_13 = arith.constant 0 : index
    %16 = vector.load %arg7[%c0_12, %c0_13] : memref<256x128xbf16, #tpu.memory_space<vmem>>, vector<256x128xbf16>
    tpu.vector_store %arg7[%c0_12, %c0_13], %15 {strides = array<i32>} : memref<256x128xbf16, #tpu.memory_space<vmem>>, vector<256x128xbf16>,
    return
  }
  func.func @transform_0(%arg0: i32, %arg1: i32, %arg2: i32) -> (i32, i32, i32) {
    %c0_i32 = arith.constant 0 : i32
    %c0_i32_0 = arith.constant 0 : i32
    return %arg0, %arg2, %c0_i32 : i32, i32, i32
  }
  func.func @transform_1(%arg0: i32, %arg1: i32, %arg2: i32) -> (i32, i32, i32) {
    %c0_i32 = arith.constant 0 : i32
    %c0_i32_0 = arith.constant 0 : i32
    return %arg0, %c0_i32, %arg1 : i32, i32, i32
  }
  func.func @transform_2(%arg0: i32, %arg1: i32, %arg2: i32) -> (i32, i32, i32) {
    %c0_i32 = arith.constant 0 : i32
    %c0_i32_0 = arith.constant 0 : i32
    return %arg0, %c0_i32, %arg1 : i32, i32, i32
  }
  func.func @transform_3(%arg0: i32, %arg1: i32, %arg2: i32) -> (i32, i32, i32) {
    %c0_i32 = arith.constant 0 : i32
    %c0_i32_0 = arith.constant 0 : i32
    return %arg0, %c0_i32, %arg1 : i32, i32, i32
  }
  func.func @transform_4(%arg0: i32, %arg1: i32, %arg2: i32) -> (i32, i32) {
    %c1_i32 = arith.constant 1 : i32
    %0 = arith.muli %arg0, %c1_i32 : i32
    %1 = arith.addi %0, %arg1 : i32
    %c0_i32 = arith.constant 0 : i32
    return %arg2, %1 : i32, i32
  }
}

</mosaic_0001>

<bundles_post_ra>
// kernel: tpu_custom_call.1
= control target key start
LH: loop header
LB: loop body
LE: loop exit
PB: predicated region body
PF: predicated region fallthrough
CT: control target
= control target key end

     0   :  { %9 = vsyncpa [#allocation3], 0  ;;  %s1986_s0 = inlined_call_operand.vmem [shape: bf16[1,2048,147], index: 0, kind: input, shape index: {}]   ;;  %s1987_s1 = inlined_call_operand.vmem [shape: bf16[1,147,128], index: 1, kind: input, shape index: {}]   ;;  %s1988_s2 = inlined_call_operand.vmem [shape: f32[1,1,128], index: 2, kind: input, shape index: {}]   ;;  %s1989_s3 = inlined_call_operand.vmem [shape: f32[1,1,128], index: 3, kind: input, shape index: {}]   ;;  %s1990_s4 = inlined_call_operand.hbm [shape: bf16[2048,128], index: 4, kind: output, shape index: {}]  }
   0x1   :  { %11 = vsyncpa [#allocation3 + $0x1], 0  ;;  %s1696_s15 = smov 0   ;;  %s1698_s16 = smov 0  }
   0x2   :  { %s1700_s17 = smov 0   ;;  %s1702_s18 = smov 0  }
   0x3   :  { %s1704_s19 = smov 0   ;;  %s1706_s20 = smov 0  }
   0x4 LB: > { %s1213_s21 = sadd.s32 4294967295, %s1664_s20   ;;  %s1214_s22 = sadd.s32 4294967294, %s1664_s20   ;;  %s1664_s20 = sphi %s1706_s20, %s17_s20   ;;  %s1660_s19 = sphi %s1704_s19, %s1997_s19   ;;  %s1656_s18 = sphi %s1702_s18, %s1996_s18   ;;  %s1652_s17 = sphi %s1700_s17, %s1995_s17   ;;  %s1648_s16 = sphi %s1698_s16, %s1994_s16   ;;  %s1644_s15 = sphi %s1696_s15, %s1993_s15  }
   0x5   : > { %s29_s23 = sadd.s32 1, %s1660_s19  ;;  %s159_s24 = sadd.s32 1, %s1652_s17 }
   0x6   : > { %p30_p0 = scmp.ge.s32.totalorder %s29_s23, 8  ;;  %p169_p1 = scmp.ne.s32.totalorder %s1652_s17, %s1648_s16 }
   0x7   : > { %p170_p2 = scmp.eq.s32.totalorder %s1213_s21, 7  ;;  %p175_p3 = scmp.ne.s32.totalorder %s1648_s16, %s1644_s15 }
   0x8   : > { %s1999_s23 = smov (%p30_p0, %s29_s23), 0  ;;  %p176_p5 = scmp.eq.s32.totalorder %s1214_s22, 7 }
   0x9   : > { %p1736_p4 = por %p170_p2, %p169_p1  ;;  %s154_s26 = ssub.s32 %s1660_s19, %s1999_s23 }
   0xa   : > { %p1220_p6 = scmp.ge.s32.totalorder %s1664_s20, 1  ;;  %p157_p7 = scmp.eq.s32.totalorder %s154_s26, 0 }
   0xb   : > { %p1743_p8 = por %p176_p5, %p175_p3  ;;  %p237_p9 = scmp.lt.s32.totalorder %s1664_s20, 9 }
   0xc   : > { %s1749_s28 = scalar_select %p157_p7, %s1652_s17, %s159_s24  }
   0xd   : > { %p238_p10 = pnand %p1220_p6, %p237_p9 }
   0xe   : > { %s1222_s9 = sshll.u32 (!%p238_p10), %s1656_s18, 5  ;;  %s1355_s29 = sshll.u32 (!%p238_p10), %s1656_s18, 11 }
   0xf   : > { %241 = sbr.rel (%p238_p10) target bundleno = 336 (0x150), region = 36  ;;  %p291_p11 = scmp.lt.s32.totalorder (!%p238_p10), %s1222_s9, 255 }
  0x10   : > { %s1933_s7 = scalar_lea.hbm (!%p238_p10), %s1990_s4, %s1355_s29 }
  0x14   : > { %v1530_v0 = vld [vmem:[%s1987_s1 + $0x38] sm:$0xff]   ;;  %v1666_v1 = vmov 0   ;;  %v1531_v2 = vld [vmem:[%s1987_s1 + $0x30] sm:$0xff]   ;;  %v1532_v3 = vld [vmem:[%s1987_s1 + $0x28] sm:$0xff]   ;;  %s2001_s9 = smov (!%p291_p11, %s1222_s9), 255  ;;  %vm574_vm0 = vcmask 154624  }
  0x15   : > { %630 = vmatprep.subr.bf16.mxu0 %v1666_v1  ;;  %1451 = vmatprep.subr.bf16.mxu1 %v1666_v1  ;;  %v1533_v4 = vld [vmem:[%s1987_s1 + $0x20] sm:$0xff]   ;;  %s1322_s12 = sshll.u32 %s2001_s9, 3  ;;  %v1534_v5 = vld [vmem:[%s1987_s1 + $0x18] sm:$0xff]   ;;  %v1535_v8 = vld [vmem:[%s1987_s1 + $0x10] sm:$0xff]   ;;  %vm623_vm1 = vcmask 1040384   ;;  %vm624_vm2 = vcmask 1041408  }
  0x16   : > { %631 = vmatpush1.bf16.msra.mxu0 %v1530_v0  ;;  %1461 = vmatpush1.bf16.msra.mxu1 %v1530_v0  ;;  %s1767_s21 = scalar_lea.vmem %s1986_s0, %s1322_s12  ;;  %v1536_v9 = vld [vmem:[%s1987_s1 + $0x8] sm:$0xff]   ;;  %v1667_v10 = vmov 65535   ;;  %v1537_v12 = vld [vmem:[%s1987_s1] sm:$0xff]   ;;  %s1668_s9 = smov [#allocation2]  }
  0x17   : > { %632 = vmatprep.subr.bf16.mxu0 %v1666_v1  ;;  %1452 = vmatprep.subr.bf16.mxu1 %v1666_v1  ;;  %v1542_v6 = vld [vmem:[%s1767_s21 + $0x4] ss:$8 sps:$4 sm:$0xff]   ;;  %v625_v11 = vsel %vm623_vm1, 4294967295, %v1667_v10  ;;  %v1538_v13 = vld [vmem:[%s1987_s1 + $0x48] ss:$0 sps:$4 sm:$0x33]  }
  0x18   : > { %v1545_v7 = vld [vmem:[%s1767_s21 + $0x84] ss:$8 sps:$4 sm:$0xff]   ;;  %1267 = vmatprep.mubr.msk.bf16.mxu0 %vm574_vm0, %v1542_v6  ;;  %v626_v14 = vsel %vm624_vm2, %v625_v11, 0  ;;  %v1540_v17 = vld [vmem:[%s1767_s21] ss:$8 sps:$4 sm:$0xff]   ;;  %s1592_s10 = sshll.u32 %s1668_s9, 4  ;;  %s1593_s10 = int_to_ptr.vmem [resolvable:$false] %s1592_s10 }
  0x19   : > { %1275 = vmatprep.mubr.msk.bf16.mxu1 %vm574_vm0, %v1545_v7  ;;  %v628_v15 = vand.u32 %v1538_v13, %v626_v14  ;;  %v1539_v16 = vld [vmem:[%s1987_s1 + $0x40] sm:$0xff]   ;;  %v1546_v19 = vld [vmem:[%s1767_s21 + $0x14] ss:$8 sps:$4 sm:$0xff]   ;;  %v1550_v21 = vld [vmem:[%s1767_s21 + $0x10] ss:$8 sps:$4 sm:$0xff]   ;;  %s1594_s11 = scalar_lea.vmem %s1593_s10, 4096 }
  0x1a   : > { %633 = vmatpush1.bf16.msra.mxu0 %v1531_v2  ;;  %1462 = vmatpush1.bf16.msra.mxu1 %v1531_v2  ;;  %v1543_v18 = vld [vmem:[%s1767_s21 + $0x80] ss:$8 sps:$4 sm:$0xff]   ;;  %v1548_v20 = vld [vmem:[%s1767_s21 + $0x94] ss:$8 sps:$4 sm:$0xff]   ;;  %v1551_v22 = vld [vmem:[%s1767_s21 + $0x90] ss:$8 sps:$4 sm:$0xff]  }
  0x1b   : > { %634 = vmatprep.subr.bf16.mxu0 %v1666_v1  ;;  %1453 = vmatprep.subr.bf16.mxu1 %v1666_v1  ;;  %v1552_v23 = vld [vmem:[%s1767_s21 + $0x24] ss:$8 sps:$4 sm:$0xff]   ;;  %v1556_v25 = vld [vmem:[%s1767_s21 + $0x20] ss:$8 sps:$4 sm:$0xff]   ;;  %v1558_v27 = vld [vmem:[%s1767_s21 + $0x34] ss:$8 sps:$4 sm:$0xff]  }
  0x1c   : > { %v1554_v24 = vld [vmem:[%s1767_s21 + $0xa4] ss:$8 sps:$4 sm:$0xff]   ;;  %v1557_v26 = vld [vmem:[%s1767_s21 + $0xa0] ss:$8 sps:$4 sm:$0xff]   ;;  %v1560_v28 = vld [vmem:[%s1767_s21 + $0xb4] ss:$8 sps:$4 sm:$0xff]  }
  0x1d   : > { %v1562_v29 = vld [vmem:[%s1767_s21 + $0x30] ss:$8 sps:$4 sm:$0xff]   ;;  %v1564_v31 = vld [vmem:[%s1767_s21 + $0x44] ss:$8 sps:$4 sm:$0xff]   ;;  %v1568_v33 = vld [vmem:[%s1767_s21 + $0x40] ss:$8 sps:$4 sm:$0xff]  }
  0x1e   : > { %635 = vmatpush1.bf16.msra.mxu0 %v1532_v3  ;;  %1463 = vmatpush1.bf16.msra.mxu1 %v1532_v3  ;;  %v1563_v30 = vld [vmem:[%s1767_s21 + $0xb0] ss:$8 sps:$4 sm:$0xff]   ;;  %v1566_v32 = vld [vmem:[%s1767_s21 + $0xc4] ss:$8 sps:$4 sm:$0xff]   ;;  %v1569_v34 = vld [vmem:[%s1767_s21 + $0xc0] ss:$8 sps:$4 sm:$0xff]  }
  0x1f   : > { %636 = vmatprep.subr.bf16.mxu0 %v1666_v1  ;;  %1454 = vmatprep.subr.bf16.mxu1 %v1666_v1  ;;  %v1570_v35 = vld [vmem:[%s1767_s21 + $0x54] ss:$8 sps:$4 sm:$0xff]   ;;  %v1574_v37 = vld [vmem:[%s1767_s21 + $0x50] ss:$8 sps:$4 sm:$0xff]   ;;  %v1576_v39 = vld [vmem:[%s1767_s21 + $0x64] ss:$8 sps:$4 sm:$0xff]  }
  0x20   : > { %v1572_v36 = vld [vmem:[%s1767_s21 + $0xd4] ss:$8 sps:$4 sm:$0xff]   ;;  %v1575_v38 = vld [vmem:[%s1767_s21 + $0xd0] ss:$8 sps:$4 sm:$0xff]   ;;  %v1578_v40 = vld [vmem:[%s1767_s21 + $0xe4] ss:$8 sps:$4 sm:$0xff]  }
  0x21   : > { %v1580_v41 = vld [vmem:[%s1767_s21 + $0x60] ss:$8 sps:$4 sm:$0xff]   ;;  %v1582_v43 = vld [vmem:[%s1767_s21 + $0x74] ss:$8 sps:$4 sm:$0xff]   ;;  %v1586_v45 = vld [vmem:[%s1767_s21 + $0x70] ss:$8 sps:$4 sm:$0xff]  }
  0x22   : > { %637 = vmatpush1.bf16.msra.mxu0 %v1533_v4  ;;  %1464 = vmatpush1.bf16.msra.mxu1 %v1533_v4  ;;  %v1581_v42 = vld [vmem:[%s1767_s21 + $0xe0] ss:$8 sps:$4 sm:$0xff]   ;;  %v1584_v44 = vld [vmem:[%s1767_s21 + $0xf4] ss:$8 sps:$4 sm:$0xff]   ;;  %v1587_v46 = vld [vmem:[%s1767_s21 + $0xf0] ss:$8 sps:$4 sm:$0xff]  }
  0x23   : > { %638 = vmatprep.subr.bf16.mxu0 %v1666_v1  ;;  %1455 = vmatprep.subr.bf16.mxu1 %v1666_v1  ;;  %v1838_v47 = vld [vmem:[%s1988_s2] ss:$0 sm:$0xff]  ;;  %s285_s21 = sand.u32 1, %s1648_s16  }
  0x24   : > { %v1844_v51 = vld [vmem:[%s1989_s3] ss:$0 sm:$0xff]  ;;  %s1221_s24 = sshll.u32 %s285_s21, 7  ;;  %s1941_s18 = scalar_lea.sflag [#allocation3], %s285_s21 }
  0x25   : > { %s1860_s26 = scalar_lea.vmem [#allocation2], %s1221_s24 }
  0x26   : > { %639 = vmatpush1.bf16.msra.mxu0 %v1534_v5  ;;  %1465 = vmatpush1.bf16.msra.mxu1 %v1534_v5  ;;  %s1077_s30 = sshll.u32 %s1860_s26, 4  ;;  %s1935_s30 = int_to_ptr.vmem [resolvable:$true] %s1077_s30 }
  0x27   : > { %640 = vmatprep.subr.bf16.mxu0 %v1666_v1  ;;  %1456 = vmatprep.subr.bf16.mxu1 %v1666_v1  ;;  %s1588_s8 = scalar_lea.vmem %s1935_s30, 2048  ;;  %p1595_p1 = scmp.lt.s32.totalorder %s1935_s30, %s1593_s10 }
  0x28   : > { %p1589_p12 = scmp.ne.s32.totalorder %s1935_s30, %s1588_s8  ;;  %p1596_p2 = scmp.lt.s32.totalorder %s1594_s11, %s1588_s8 }
  0x2a   : > { %641 = vmatpush1.bf16.msra.mxu0 %v1535_v8  ;;  %1466 = vmatpush1.bf16.msra.mxu1 %v1535_v8  ;;  %p1590_p13 = pnand %p1589_p12, %p1736_p4  ;;  %p1597_p3 = por %p1596_p2, %p1595_p1 }
  0x2b   : > { %642 = vmatprep.subr.bf16.mxu0 %v1666_v1  ;;  %1457 = vmatprep.subr.bf16.mxu1 %v1666_v1 }
  0x2c   : > { %p1591_p0 = pneg %p1590_p13 }
  0x2e   : > { %643 = vmatpush1.bf16.msra.mxu0 %v1536_v9  ;;  %1467 = vmatpush1.bf16.msra.mxu1 %v1536_v9  ;;  %p1598_p5 = pnand %p1597_p3, %p1591_p0 }
  0x2f   : > { %644 = vmatprep.subr.bf16.mxu0 %v1666_v1  ;;  %1458 = vmatprep.subr.bf16.mxu1 %v1666_v1 }
  0x32   : > { %645 = vmatpush1.bf16.msra.mxu0 %v1537_v12  ;;  %1468 = vmatpush1.bf16.msra.mxu1 %v1537_v12 }
  0x33   : > { %658 = vmatprep.subr.bf16.mxu0 %v1666_v1  ;;  %1459 = vmatprep.subr.bf16.mxu1 %v1666_v1 }
  0x36   : > { %659 = vmatpush2.bf16.msra.mxu0 %v628_v15  ;;  %1469 = vmatpush2.bf16.msra.mxu1 %v628_v15 }
  0x37   : > { %660 = vmatprep.subr.bf16.mxu0 %v1666_v1  ;;  %1460 = vmatprep.subr.bf16.mxu1 %v1666_v1 }
  0x3a   : > { %661 = vmatpush2.bf16.msra.mxu0 %v1539_v16  ;;  %1470 = vmatpush2.bf16.msra.mxu1 %v1539_v16 }
  0x3d   : > { %663 = vmatmul.mubr.bf16.vlgmr.msra.gmra.mxu0 %v1540_v17  ;;  %727 = vmatmul.mubr.bf16.vlgmr.msra.gmra.mxu1 %v1543_v18 }
  0x3e   : > { %1268 = vmatprep.mubr.msk.bf16.mxu0 %vm574_vm0, %v1546_v19  ;;  %1276 = vmatprep.mubr.msk.bf16.mxu1 %vm574_vm0, %v1548_v20 }
  0x45   : > { %671 = vmatmul.mubr.bf16.gmra.mxu0 %v1550_v21  ;;  %735 = vmatmul.mubr.bf16.gmra.mxu1 %v1551_v22 }
  0x46   : > { %1269 = vmatprep.mubr.msk.bf16.mxu0 %vm574_vm0, %v1552_v23  ;;  %1277 = vmatprep.mubr.msk.bf16.mxu1 %vm574_vm0, %v1554_v24 }
  0x4d   : > { %679 = vmatmul.mubr.bf16.gmra.mxu0 %v1556_v25  ;;  %743 = vmatmul.mubr.bf16.gmra.mxu1 %v1557_v26 }
  0x4e   : > { %1270 = vmatprep.mubr.msk.bf16.mxu0 %vm574_vm0, %v1558_v27  ;;  %1278 = vmatprep.mubr.msk.bf16.mxu1 %vm574_vm0, %v1560_v28 }
  0x55   : > { %687 = vmatmul.mubr.bf16.gmra.mxu0 %v1562_v29  ;;  %751 = vmatmul.mubr.bf16.gmra.mxu1 %v1563_v30 }
  0x56   : > { %1271 = vmatprep.mubr.msk.bf16.mxu0 %vm574_vm0, %v1564_v31  ;;  %1279 = vmatprep.mubr.msk.bf16.mxu1 %vm574_vm0, %v1566_v32 }
  0x5d   : > { %695 = vmatmul.mubr.bf16.gmra.mxu0 %v1568_v33  ;;  %759 = vmatmul.mubr.bf16.gmra.mxu1 %v1569_v34 }
  0x5e   : > { %1272 = vmatprep.mubr.msk.bf16.mxu0 %vm574_vm0, %v1570_v35  ;;  %1280 = vmatprep.mubr.msk.bf16.mxu1 %vm574_vm0, %v1572_v36 }
  0x65   : > { %703 = vmatmul.mubr.bf16.gmra.mxu0 %v1574_v37  ;;  %767 = vmatmul.mubr.bf16.gmra.mxu1 %v1575_v38 }
  0x66   : > { %1273 = vmatprep.mubr.msk.bf16.mxu0 %vm574_vm0, %v1576_v39  ;;  %1281 = vmatprep.mubr.msk.bf16.mxu1 %vm574_vm0, %v1578_v40 }
  0x6d   : > { %711 = vmatmul.mubr.bf16.gmra.mxu0 %v1580_v41  ;;  %775 = vmatmul.mubr.bf16.gmra.mxu1 %v1581_v42 }
  0x6e   : > { %1274 = vmatprep.mubr.msk.bf16.mxu0 %vm574_vm0, %v1582_v43  ;;  %1282 = vmatprep.mubr.msk.bf16.mxu1 %vm574_vm0, %v1584_v44 }
  0x75   : > { %719 = vmatmul.mubr.bf16.gmra.mxu0 %v1586_v45  ;;  %783 = vmatmul.mubr.bf16.gmra.mxu1 %v1587_v46 }
  0xfd   : > { %v664_v48 = vpop.f32.mrf.mxu0  ;;  %v728_v49 = vpop.f32.mrf.mxu1 }
  0xfe   : > { %v798_v50 = vmul.f32 %v1838_v47, %v664_v48  ;;  %v814_v52 = vmul.f32 %v1838_v47, %v728_v49 }
  0xff   : > { %v666_v53 = vpop.f32.mrf.mxu0  ;;  %v730_v54 = vpop.f32.mrf.mxu1 }
 0x100   : > { %v837_v55 = vadd.f32 %v1844_v51, %v798_v50  ;;  %v853_v56 = vadd.f32 %v1844_v51, %v814_v52 }
 0x101   : > { %v667_v57 = vpop.f32.mrf.mxu0  ;;  %v731_v58 = vpop.f32.mrf.mxu1 }
 0x102   : > { %v799_v59 = vmul.f32 %v1838_v47, %v667_v57  ;;  %v815_v60 = vmul.f32 %v1838_v47, %v731_v58  ;;  %v869_v1 = vmax.f32 %v837_v55, 0.0  ;;  %v885_v2 = vmax.f32 %v853_v56, 0.0 }
 0x103   : > { %v669_v61 = vpop.f32.mrf.mxu0  ;;  %v733_v62 = vpop.f32.mrf.mxu1 }
 0x104   : > { %v838_v63 = vadd.f32 %v1844_v51, %v799_v59  ;;  %v854_v0 = vadd.f32 %v1844_v51, %v815_v60 }
 0x105   : > { %v672_v3 = vpop.f32.mrf.mxu0  ;;  %v736_v4 = vpop.f32.mrf.mxu1 }
 0x106   : > { %v870_v5 = vmax.f32 %v838_v63, 0.0  ;;  %v886_v6 = vmax.f32 %v854_v0, 0.0  ;;  %v800_v7 = vmul.f32 %v1838_v47, %v672_v3  ;;  %v816_v8 = vmul.f32 %v1838_v47, %v736_v4 }
 0x107   : > { %v674_v9 = vpop.f32.mrf.mxu0  ;;  %v738_v10 = vpop.f32.mrf.mxu1 }
 0x108   : > { %v1359_v11 = vpack.c.bf16 %v870_v5, %v869_v1  ;;  %v1399_v12 = vpack.c.bf16 %v886_v6, %v885_v2  ;;  %v839_v13 = vadd.f32 %v1844_v51, %v800_v7  ;;  %v855_v14 = vadd.f32 %v1844_v51, %v816_v8 }
 0x109   : > { %v675_v15 = vpop.f32.mrf.mxu0  ;;  %v739_v16 = vpop.f32.mrf.mxu1 }
 0x10a   : > { %1360 = vst [vmem:[%s1860_s26] sm:$0xff] %v1359_v11   ;;  %1443 = vst [vmem:[%s1860_s26 + $0x40] sm:$0xff] %v1399_v12   ;;  %v801_v17 = vmul.f32 %v1838_v47, %v675_v15  ;;  %v817_v18 = vmul.f32 %v1838_v47, %v739_v16  ;;  %v871_v23 = vmax.f32 %v839_v13, 0.0  ;;  %v887_v24 = vmax.f32 %v855_v14, 0.0 }
 0x10b   : > { %v677_v19 = vpop.f32.mrf.mxu0  ;;  %v741_v20 = vpop.f32.mrf.mxu1 }
 0x10c   : > { %v840_v21 = vadd.f32 %v1844_v51, %v801_v17  ;;  %v856_v22 = vadd.f32 %v1844_v51, %v817_v18 }
 0x10d   : > { %v680_v25 = vpop.f32.mrf.mxu0  ;;  %v744_v26 = vpop.f32.mrf.mxu1 }
 0x10e   : > { %v872_v27 = vmax.f32 %v840_v21, 0.0  ;;  %v888_v28 = vmax.f32 %v856_v22, 0.0  ;;  %v802_v29 = vmul.f32 %v1838_v47, %v680_v25  ;;  %v818_v30 = vmul.f32 %v1838_v47, %v744_v26 }
 0x10f   : > { %v682_v31 = vpop.f32.mrf.mxu0  ;;  %v746_v32 = vpop.f32.mrf.mxu1 }
 0x110   : > { %v1364_v33 = vpack.c.bf16 %v872_v27, %v871_v23  ;;  %v1404_v34 = vpack.c.bf16 %v888_v28, %v887_v24  ;;  %v841_v35 = vadd.f32 %v1844_v51, %v802_v29  ;;  %v857_v36 = vadd.f32 %v1844_v51, %v818_v30 }
 0x111   : > { %v683_v37 = vpop.f32.mrf.mxu0  ;;  %v747_v38 = vpop.f32.mrf.mxu1 }
 0x112   : > { %1436 = vst [vmem:[%s1860_s26 + $0x8] sm:$0xff] %v1364_v33   ;;  %1444 = vst [vmem:[%s1860_s26 + $0x48] sm:$0xff] %v1404_v34   ;;  %v803_v39 = vmul.f32 %v1838_v47, %v683_v37  ;;  %v819_v40 = vmul.f32 %v1838_v47, %v747_v38  ;;  %v873_v45 = vmax.f32 %v841_v35, 0.0  ;;  %v889_v46 = vmax.f32 %v857_v36, 0.0 }
 0x113   : > { %v685_v41 = vpop.f32.mrf.mxu0  ;;  %v749_v42 = vpop.f32.mrf.mxu1 }
 0x114   : > { %v842_v43 = vadd.f32 %v1844_v51, %v803_v39  ;;  %v858_v44 = vadd.f32 %v1844_v51, %v819_v40 }
 0x115   : > { %v688_v48 = vpop.f32.mrf.mxu0  ;;  %v752_v49 = vpop.f32.mrf.mxu1 }
 0x116   : > { %v874_v50 = vmax.f32 %v842_v43, 0.0  ;;  %v890_v52 = vmax.f32 %v858_v44, 0.0  ;;  %v804_v53 = vmul.f32 %v1838_v47, %v688_v48  ;;  %v820_v54 = vmul.f32 %v1838_v47, %v752_v49 }
 0x117   : > { %v690_v55 = vpop.f32.mrf.mxu0  ;;  %v754_v56 = vpop.f32.mrf.mxu1 }
 0x118   : > { %v1369_v57 = vpack.c.bf16 %v874_v50, %v873_v45  ;;  %v1409_v58 = vpack.c.bf16 %v890_v52, %v889_v46  ;;  %v843_v59 = vadd.f32 %v1844_v51, %v804_v53  ;;  %v859_v60 = vadd.f32 %v1844_v51, %v820_v54 }
 0x119   : > { %v691_v61 = vpop.f32.mrf.mxu0  ;;  %v755_v62 = vpop.f32.mrf.mxu1 }
 0x11a   : > { %1437 = vst [vmem:[%s1860_s26 + $0x10] sm:$0xff] %v1369_v57   ;;  %1445 = vst [vmem:[%s1860_s26 + $0x50] sm:$0xff] %v1409_v58   ;;  %v805_v63 = vmul.f32 %v1838_v47, %v691_v61  ;;  %v821_v0 = vmul.f32 %v1838_v47, %v755_v62  ;;  %v875_v5 = vmax.f32 %v843_v59, 0.0  ;;  %v891_v6 = vmax.f32 %v859_v60, 0.0 }
 0x11b   : > { %v693_v1 = vpop.f32.mrf.mxu0  ;;  %v757_v2 = vpop.f32.mrf.mxu1 }
 0x11c   : > { %v844_v3 = vadd.f32 %v1844_v51, %v805_v63  ;;  %v860_v4 = vadd.f32 %v1844_v51, %v821_v0 }
 0x11d   : > { %v696_v7 = vpop.f32.mrf.mxu0  ;;  %v760_v8 = vpop.f32.mrf.mxu1 }
 0x11e   : > { %v876_v9 = vmax.f32 %v844_v3, 0.0  ;;  %v892_v10 = vmax.f32 %v860_v4, 0.0  ;;  %v806_v11 = vmul.f32 %v1838_v47, %v696_v7  ;;  %v822_v12 = vmul.f32 %v1838_v47, %v760_v8 }
 0x11f   : > { %v698_v13 = vpop.f32.mrf.mxu0  ;;  %v762_v14 = vpop.f32.mrf.mxu1 }
 0x120   : > { %v1374_v15 = vpack.c.bf16 %v876_v9, %v875_v5  ;;  %v1414_v16 = vpack.c.bf16 %v892_v10, %v891_v6  ;;  %v845_v17 = vadd.f32 %v1844_v51, %v806_v11  ;;  %v861_v18 = vadd.f32 %v1844_v51, %v822_v12 }
 0x121   : > { %v699_v19 = vpop.f32.mrf.mxu0  ;;  %v763_v20 = vpop.f32.mrf.mxu1 }
 0x122   : > { %1438 = vst [vmem:[%s1860_s26 + $0x18] sm:$0xff] %v1374_v15   ;;  %1446 = vst [vmem:[%s1860_s26 + $0x58] sm:$0xff] %v1414_v16   ;;  %v807_v21 = vmul.f32 %v1838_v47, %v699_v19  ;;  %v823_v22 = vmul.f32 %v1838_v47, %v763_v20  ;;  %v877_v27 = vmax.f32 %v845_v17, 0.0  ;;  %v893_v28 = vmax.f32 %v861_v18, 0.0 }
 0x123   : > { %v701_v23 = vpop.f32.mrf.mxu0  ;;  %v765_v24 = vpop.f32.mrf.mxu1 }
 0x124   : > { %v846_v25 = vadd.f32 %v1844_v51, %v807_v21  ;;  %v862_v26 = vadd.f32 %v1844_v51, %v823_v22 }
 0x125   : > { %v704_v29 = vpop.f32.mrf.mxu0  ;;  %v768_v30 = vpop.f32.mrf.mxu1 }
 0x126   : > { %v878_v31 = vmax.f32 %v846_v25, 0.0  ;;  %v894_v32 = vmax.f32 %v862_v26, 0.0  ;;  %v808_v33 = vmul.f32 %v1838_v47, %v704_v29  ;;  %v824_v34 = vmul.f32 %v1838_v47, %v768_v30 }
 0x127   : > { %v706_v35 = vpop.f32.mrf.mxu0  ;;  %v770_v36 = vpop.f32.mrf.mxu1 }
 0x128   : > { %v1379_v37 = vpack.c.bf16 %v878_v31, %v877_v27  ;;  %v1419_v38 = vpack.c.bf16 %v894_v32, %v893_v28  ;;  %v847_v39 = vadd.f32 %v1844_v51, %v808_v33  ;;  %v863_v40 = vadd.f32 %v1844_v51, %v824_v34 }
 0x129   : > { %v707_v41 = vpop.f32.mrf.mxu0  ;;  %v771_v42 = vpop.f32.mrf.mxu1 }
 0x12a   : > { %1439 = vst [vmem:[%s1860_s26 + $0x20] sm:$0xff] %v1379_v37   ;;  %1447 = vst [vmem:[%s1860_s26 + $0x60] sm:$0xff] %v1419_v38   ;;  %v809_v43 = vmul.f32 %v1838_v47, %v707_v41  ;;  %v825_v44 = vmul.f32 %v1838_v47, %v771_v42  ;;  %v879_v50 = vmax.f32 %v847_v39, 0.0  ;;  %v895_v52 = vmax.f32 %v863_v40, 0.0 }
 0x12b   : > { %v709_v45 = vpop.f32.mrf.mxu0  ;;  %v773_v46 = vpop.f32.mrf.mxu1 }
 0x12c   : > { %v848_v48 = vadd.f32 %v1844_v51, %v809_v43  ;;  %v864_v49 = vadd.f32 %v1844_v51, %v825_v44 }
 0x12d   : > { %v712_v53 = vpop.f32.mrf.mxu0  ;;  %v776_v54 = vpop.f32.mrf.mxu1 }
 0x12e   : > { %v880_v55 = vmax.f32 %v848_v48, 0.0  ;;  %v896_v56 = vmax.f32 %v864_v49, 0.0  ;;  %v810_v57 = vmul.f32 %v1838_v47, %v712_v53  ;;  %v826_v58 = vmul.f32 %v1838_v47, %v776_v54 }
 0x12f   : > { %v714_v59 = vpop.f32.mrf.mxu0  ;;  %v778_v60 = vpop.f32.mrf.mxu1 }
 0x130   : > { %v1384_v61 = vpack.c.bf16 %v880_v55, %v879_v50  ;;  %v1424_v62 = vpack.c.bf16 %v896_v56, %v895_v52  ;;  %v849_v63 = vadd.f32 %v1844_v51, %v810_v57  ;;  %v865_v0 = vadd.f32 %v1844_v51, %v826_v58 }
 0x131   : > { %v715_v1 = vpop.f32.mrf.mxu0  ;;  %v779_v2 = vpop.f32.mrf.mxu1 }
 0x132   : > { %1440 = vst [vmem:[%s1860_s26 + $0x28] sm:$0xff] %v1384_v61   ;;  %1448 = vst [vmem:[%s1860_s26 + $0x68] sm:$0xff] %v1424_v62   ;;  %v811_v3 = vmul.f32 %v1838_v47, %v715_v1  ;;  %v827_v4 = vmul.f32 %v1838_v47, %v779_v2  ;;  %v881_v9 = vmax.f32 %v849_v63, 0.0  ;;  %v897_v10 = vmax.f32 %v865_v0, 0.0 }
 0x133   : > { %v717_v5 = vpop.f32.mrf.mxu0  ;;  %v781_v6 = vpop.f32.mrf.mxu1 }
 0x134   : > { %v850_v7 = vadd.f32 %v1844_v51, %v811_v3  ;;  %v866_v8 = vadd.f32 %v1844_v51, %v827_v4 }
 0x135   : > { %v720_v11 = vpop.f32.mrf.mxu0  ;;  %v784_v12 = vpop.f32.mrf.mxu1 }
 0x136   : > { %v882_v13 = vmax.f32 %v850_v7, 0.0  ;;  %v898_v14 = vmax.f32 %v866_v8, 0.0  ;;  %v812_v15 = vmul.f32 %v1838_v47, %v720_v11  ;;  %v828_v16 = vmul.f32 %v1838_v47, %v784_v12 }
 0x137   : > { %v722_v17 = vpop.f32.mrf.mxu0  ;;  %v786_v18 = vpop.f32.mrf.mxu1 }
 0x138   : > { %v1389_v19 = vpack.c.bf16 %v882_v13, %v881_v9  ;;  %v1429_v20 = vpack.c.bf16 %v898_v14, %v897_v10  ;;  %v851_v23 = vadd.f32 %v1844_v51, %v812_v15  ;;  %v867_v24 = vadd.f32 %v1844_v51, %v828_v16 }
 0x139   : > { %v723_v21 = vpop.f32.mrf.mxu0  ;;  %v787_v22 = vpop.f32.mrf.mxu1 }
 0x13a   : > { %1441 = vst [vmem:[%s1860_s26 + $0x30] sm:$0xff] %v1389_v19   ;;  %1449 = vst [vmem:[%s1860_s26 + $0x70] sm:$0xff] %v1429_v20   ;;  %v813_v25 = vmul.f32 %v1838_v47, %v723_v21  ;;  %v829_v26 = vmul.f32 %v1838_v47, %v787_v22  ;;  %v883_v31 = vmax.f32 %v851_v23, 0.0  ;;  %v899_v32 = vmax.f32 %v867_v24, 0.0 }
 0x13b   : > { %v725_v27 = vpop.f32.mrf.mxu0  ;;  %v789_v28 = vpop.f32.mrf.mxu1 }
 0x13c   : > { %v852_v29 = vadd.f32 %v1844_v51, %v813_v25  ;;  %v868_v30 = vadd.f32 %v1844_v51, %v829_v26 }
 0x13e   : > { %v884_v33 = vmax.f32 %v852_v29, 0.0  ;;  %v900_v34 = vmax.f32 %v868_v30, 0.0 }
 0x140   : > { %v1394_v47 = vpack.c.bf16 %v884_v33, %v883_v31  ;;  %v1434_v35 = vpack.c.bf16 %v900_v34, %v899_v32 }
 0x142   : > { %1442 = vst [vmem:[%s1860_s26 + $0x38] sm:$0xff] %v1394_v47   ;;  %1450 = vst [vmem:[%s1860_s26 + $0x78] sm:$0xff] %v1434_v35  }
 0x143   : > { %1601 = shalt.err (!%p1598_p5)
}
 0x144   : > { %s1602_s12 = scalar_lea.hbm %s1933_s7, 2048  ;;  %s1606_s22 = scalar_lea.hbm %s1990_s4, 16384 }
 0x145   : > { %p1603_p6 = scmp.ne.s32.totalorder %s1933_s7, %s1602_s12  ;;  %p1607_p10 = scmp.lt.s32.totalorder %s1933_s7, %s1990_s4 }
 0x146   : > { %p1608_p11 = scmp.lt.s32.totalorder %s1606_s22, %s1602_s12 }
 0x147   : > { %p1604_p7 = pnand %p1603_p6, %p1736_p4 }
 0x148   : > { %p1609_p12 = por %p1608_p11, %p1607_p10 }
 0x149   : > { %p1605_p9 = pneg %p1604_p7 }
 0x14b   : > { %p1610_p13 = pnand %p1609_p12, %p1605_p9 }
 0x14d   : > { %1613 = shalt.err (!%p1610_p13)
}
 0x14e   : > { %s1669_s26 = smov 64   ;;  %s1670_s29 = smov 4  }
 0x14f   : > { %1471 = dma.vmem_to_hbm [thread:$0]  (%p1736_p4), %s1935_s30, 2048, %s1933_s7, %s1941_s18, %s1669_s26, %s1669_s26, %s1670_s29  }
 0x150 PF: > { %p1477_p0 = scmp.ge.s32.totalorder %s1664_s20, 2  ;;  %s1092_s5 = sand.u32 1, %s1644_s15  }
 0x151   : > { %s1093_s6 = scalar_lea.sflag [#allocation3], %s1092_s5 }
 0x152   : > { %p1474_p1 = pnand %p1477_p0, %p1743_p8 }
 0x154   : > { %p1475_p2 = pneg %p1474_p1 }
 0x156   : > { %1639 = dma.done.wait (%p1475_p2), %s1093_s6, 2048  }
 0x157   : > { %1641 = vsyncadd (%p1475_p2), %s1093_s6, 4294965248  ;;  %s17_s20 = sadd.s32 1, %s1664_s20   ;;  %s1993_s15 = smov %s1648_s16 }
 0x158   : > { %p14_p3 = scmp.ge.s32.totalorder %s17_s20, 10   ;;  %s1994_s16 = smov %s1652_s17 }
 0x159   : > { %s1995_s17 = smov %s1749_s28  ;;  %s1996_s18 = smov %s1660_s19 }
 0x15a   : > { %s1997_s19 = smov %s1999_s23  ;;  %16 = sbr.rel (!%p14_p3) target bundleno = 4 (0x4), region = 80 }
 0x15f   :  { %1098 = vsyncpa [#allocation3], 1 }
 0x160   :  { %1100 = vsyncpa [#allocation3 + $0x1], 1 }

</bundles_post_ra>
